<compile_context>
chip_gen: v7x
topology: tpu7x:2x2x1
jax: 0.10.0
libtpu: 0.0.40
codegen_flags: <defaults>
</compile_context>

<pallas_src>
import functools
import math

import jax
import jax.numpy as jnp
from jax.experimental import pallas as pl
from jax.experimental.pallas import tpu as pltpu

_NEG_LOG2E = -math.log2(math.e)


def _mine_kernel(x_ref, y_ref, ys_ref, w1_ref, b1_ref, w2_ref, out_ref,
                 jsum_ref, m_ref, s_ref, *, inv_batch):
    # x_ref   : (T, D)   f32 VMEM   row tile of x
    # y_ref   : (T, D)   f32 VMEM   row tile of y
    # ys_ref  : (T, D)   f32 VMEM   row tile of y[perm] (already permuted)
    # w1_ref  : (2D, H)  f32 VMEM   first Linear weight, [x; y] row layout
    # b1_ref  : (1, H)   f32 VMEM
    # w2_ref  : (1, H)   f32 VMEM   second Linear weight as a lane-dense row
    # out_ref : (1, 1)   f32 VMEM   scalar loss (written on the last tile)
    # jsum_ref/m_ref/s_ref : (1,1) f32 VMEM scratch — running joint-logit sum,
    #   running marginal-logit max, running scaled exp-sum (online logsumexp).
    i = pl.program_id(0)
    _, d = x_ref.shape

    @pl.when(i == 0)
    def _():
        jsum_ref[...] = jnp.zeros_like(jsum_ref)
        m_ref[...] = jnp.full_like(m_ref, -jnp.inf)
        s_ref[...] = jnp.zeros_like(s_ref)

    w1 = w1_ref[...]
    b1 = b1_ref[...]
    w2 = w2_ref[...]

    # Layer 1.  x @ W1[:D] is shared by both halves; the shuffled-y rows arrive
    # pre-permuted so there is no in-kernel gather (and no B^2 one-hot).
    # TODO(synk): cast x/y/w1 to bf16 (keep f32 accumulation) once the batch is
    # large enough to be MXU-bound (~3x matmul throughput on v6e/v7x).
    xw = jnp.dot(x_ref[...], w1[:d, :], preferred_element_type=jnp.float32)
    yw = jnp.dot(y_ref[...], w1[d:, :], preferred_element_type=jnp.float32)
    ysw = jnp.dot(ys_ref[...], w1[d:, :], preferred_element_type=jnp.float32)

    pre = xw + b1
    h_joint = jnp.maximum(pre + yw, 0.0)    # rows of [x || y]
    h_marg = jnp.maximum(pre + ysw, 0.0)    # rows of [x || y[perm]]

    # Joint half: only its mean is needed -> sublane reduce (lane-dense (1,H))
    # then a single-row lane reduce; no per-row (T,1) intermediate.  b2 cancels
    # against the marginal half so it is omitted entirely.
    joint_rows = jnp.sum(h_joint * w2, axis=0, keepdims=True)        # (1, H)
    jsum_ref[...] += jnp.sum(joint_rows, axis=1, keepdims=True)      # (1, 1)

    # Marginal half: per-row logits + online (running max / scaled sum)
    # log-mean-exp across row tiles.
    l_marg = jnp.sum(h_marg * w2, axis=1, keepdims=True)             # (T, 1)
    tile_max = jnp.max(l_marg, axis=0, keepdims=True)                # (1, 1)
    m_old = m_ref[...]
    m_new = jnp.maximum(m_old, tile_max)
    tile_sum = jnp.sum(jnp.exp(l_marg - m_new), axis=0, keepdims=True)
    s_ref[...] = s_ref[...] * jnp.exp(m_old - m_new) + tile_sum
    m_ref[...] = m_new

    @pl.when(i == pl.num_programs(0) - 1)
    def _():
        mean_xy = jsum_ref[...] * inv_batch
        log_mean_exp = m_ref[...] + jnp.log(s_ref[...] * inv_batch)
        out_ref[...] = _NEG_LOG2E * (mean_xy - log_mean_exp)


@jax.jit
def mine_forward(x, y, w1, b1, w2, b2, key):
    """MINE forward. x, y: [B, D] f32; w1: [2D, H]; b1: [H]; w2: [H, 1]; b2: [1].

    Returns the scalar loss matching the PyTorch module.  b2 cancels exactly
    between mean(pred_xy) and log(mean(exp(pred_x_y))), so it never enters the
    kernel.
    """
    del b2  # exact cancellation between the two halves of the loss
    batch, data_dim = x.shape
    two_d, hidden = w1.shape
    assert two_d == 2 * data_dim

    # torch.randperm(batch) equivalent (deterministic via key).  The row gather
    # runs as a cheap O(B*D) XLA op so the permuted rows reach the kernel by
    # DMA already in order — no O(B^2) one-hot, no data-dependent indexing.
    idx = jax.random.permutation(key, batch)
    y_shuf = jnp.take(y, idx, axis=0)

    # Row tiling keeps per-step VMEM at O(TILE * (D + H)) regardless of B.
    tile = min(batch, 256)
    if batch % tile != 0:
        tile = batch  # TODO(synk): mask a ragged final tile instead.
    grid = (batch // tile,)

    kernel = functools.partial(_mine_kernel, inv_batch=1.0 / batch)

    out = pl.pallas_call(
        kernel,
        grid=grid,
        out_shape=jax.ShapeDtypeStruct((1, 1), jnp.float32),
        in_specs=[
            pl.BlockSpec((tile, data_dim), lambda i: (i, 0)),   # x rows
            pl.BlockSpec((tile, data_dim), lambda i: (i, 0)),   # y rows
            pl.BlockSpec((tile, data_dim), lambda i: (i, 0)),   # y[idx] rows
            pl.BlockSpec((two_d, hidden), lambda i: (0, 0)),    # W1 (resident)
            pl.BlockSpec((1, hidden), lambda i: (0, 0)),        # b1 (resident)
            pl.BlockSpec((1, hidden), lambda i: (0, 0)),        # w2 (resident)
        ],
        out_specs=pl.BlockSpec((1, 1), lambda i: (0, 0)),
        scratch_shapes=[
            pltpu.VMEM((1, 1), jnp.float32),   # running sum of joint logits
            pltpu.VMEM((1, 1), jnp.float32),   # running max of marginal logits
            pltpu.VMEM((1, 1), jnp.float32),   # running scaled exp-sum
        ],
        # The row axis carries the online log-mean-exp, so it is "arbitrary".
        # TODO(synk): emit per-tile (max, exp-sum, mean) partials + a trivial
        # second pass to make this axis "parallel" (use both v7x TensorCores).
        compiler_params=pltpu.CompilerParams(
            dimension_semantics=("arbitrary",)),
    )(x, y, y_shuf, w1, b1.reshape(1, hidden), w2.reshape(1, hidden))
    return out[0, 0]


def _reference_forward(x, y, w1, b1, w2, b2, key):
    """Pure-JAX reference mirroring the PyTorch module semantics."""
    batch = x.shape[0]
    idx = jax.random.permutation(key, batch)
    shuffled_y = y[idx]
    tiled_x = jnp.concatenate([x, x], axis=0)
    concat_y = jnp.concatenate([y, shuffled_y], axis=0)
    inputs = jnp.concatenate([tiled_x, concat_y], axis=1)
    h = jnp.maximum(inputs @ w1 + b1, 0.0)
    logits = h @ w2 + b2
    pred_xy = logits[:batch]
    pred_x_y = logits[batch:]
    return -math.log2(math.e) * (
        jnp.mean(pred_xy) - jnp.log(jnp.mean(jnp.exp(pred_x_y)))
    )


if __name__ == "__main__":
    # Small shapes consistent with the module: batch=8, data_dim=32, hidden=64.
    batch = 8
    data_dim = 32
    hidden = 64

    root = jax.random.PRNGKey(0)
    kx, ky, kw1, kb1, kw2, kb2, kperm = jax.random.split(root, 7)

    x = jax.random.normal(kx, (batch, data_dim), dtype=jnp.float32)
    y = jax.random.normal(ky, (batch, data_dim), dtype=jnp.float32)

    # Deterministic parameter init mirroring nn.Linear's U(-1/sqrt(fan_in), ...).
    fan1 = 2 * data_dim
    bound1 = 1.0 / math.sqrt(fan1)
    w1 = jax.random.uniform(kw1, (fan1, hidden), jnp.float32, -bound1, bound1)
    b1 = jax.random.uniform(kb1, (hidden,), jnp.float32, -bound1, bound1)

    fan2 = hidden
    bound2 = 1.0 / math.sqrt(fan2)
    w2 = jax.random.uniform(kw2, (hidden, 1), jnp.float32, -bound2, bound2)
    b2 = jax.random.uniform(kb2, (1,), jnp.float32, -bound2, bound2)

    loss = mine_forward(x, y, w1, b1, w2, b2, kperm)
    loss = jax.block_until_ready(loss)

    ref = _reference_forward(x, y, w1, b1, w2, b2, kperm)
    assert jnp.allclose(loss, ref, rtol=1e-4, atol=1e-4), (loss, ref)

    print("KERNEL_OK")
</pallas_src>

<mosaic_0001>
module attributes {stable_mosaic.version = 11 : i64} {
  func.func @_mine_kernel(%arg0: i32, %arg1: memref<8x32xf32, #tpu.memory_space<vmem>>, %arg2: memref<8x32xf32, #tpu.memory_space<vmem>>, %arg3: memref<8x32xf32, #tpu.memory_space<vmem>>, %arg4: memref<64x64xf32, #tpu.memory_space<vmem>>, %arg5: memref<1x64xf32, #tpu.memory_space<vmem>>, %arg6: memref<1x64xf32, #tpu.memory_space<vmem>>, %arg7: memref<1x1xf32, #tpu.memory_space<vmem>>, %arg8: memref<1x1xf32, #tpu.memory_space<vmem>>, %arg9: memref<1x1xf32, #tpu.memory_space<vmem>>, %arg10: memref<1x1xf32, #tpu.memory_space<vmem>>) attributes {dimension_semantics = [#tpu.dimension_semantics<arbitrary>], iteration_bounds = array<i64: 1>, scalar_prefetch = 0 : i64, scratch_operands = 3 : i64, tpu.core_type = #tpu.core_type<tc>, window_params = [{transform_indices = @transform_0, window_bounds = array<i64: 8, 32>}, {transform_indices = @transform_1, window_bounds = array<i64: 8, 32>}, {transform_indices = @transform_2, window_bounds = array<i64: 8, 32>}, {pipeline_mode = #tpu.pipeline_mode<synchronous>, transform_indices = @transform_3, window_bounds = array<i64: 64, 64>}, {pipeline_mode = #tpu.pipeline_mode<synchronous>, transform_indices = @transform_4, window_bounds = array<i64: 1, 64>}, {pipeline_mode = #tpu.pipeline_mode<synchronous>, transform_indices = @transform_5, window_bounds = array<i64: 1, 64>}, {pipeline_mode = #tpu.pipeline_mode<synchronous>, transform_indices = @transform_6, window_bounds = array<i64: 1, 1>}]} {
    %c0_i32 = arith.constant 0 : i32
    %0 = arith.cmpi eq, %arg0, %c0_i32 : i32
    %1 = arith.extui %0 : i1 to i32
    %c0_i32_0 = arith.constant 0 : i32
    %2 = arith.cmpi ne, %1, %c0_i32_0 : i32
    scf.if %2 {
      %cst_35 = arith.constant 0.000000e+00 : f32
      %55 = vector.broadcast %cst_35 : f32 to vector<1x1xf32>
      %c0_36 = arith.constant 0 : index
      %c0_37 = arith.constant 0 : index
      %56 = vector.load %arg8[%c0_36, %c0_37] : memref<1x1xf32, #tpu.memory_space<vmem>>, vector<1x1xf32>
      tpu.vector_store %arg8[%c0_36, %c0_37], %55 {strides = array<i32>} : memref<1x1xf32, #tpu.memory_space<vmem>>, vector<1x1xf32>,
      %cst_38 = arith.constant 0xFF800000 : f32
      %57 = vector.broadcast %cst_38 : f32 to vector<1x1xf32>
      %c0_39 = arith.constant 0 : index
      %c0_40 = arith.constant 0 : index
      %58 = vector.load %arg9[%c0_39, %c0_40] : memref<1x1xf32, #tpu.memory_space<vmem>>, vector<1x1xf32>
      tpu.vector_store %arg9[%c0_39, %c0_40], %57 {strides = array<i32>} : memref<1x1xf32, #tpu.memory_space<vmem>>, vector<1x1xf32>,
      %cst_41 = arith.constant 0.000000e+00 : f32
      %59 = vector.broadcast %cst_41 : f32 to vector<1x1xf32>
      %c0_42 = arith.constant 0 : index
      %c0_43 = arith.constant 0 : index
      %60 = vector.load %arg10[%c0_42, %c0_43] : memref<1x1xf32, #tpu.memory_space<vmem>>, vector<1x1xf32>
      tpu.vector_store %arg10[%c0_42, %c0_43], %59 {strides = array<i32>} : memref<1x1xf32, #tpu.memory_space<vmem>>, vector<1x1xf32>,
    } else {
    }
    %c0 = arith.constant 0 : index
    %c0_1 = arith.constant 0 : index
    %3 = vector.load %arg4[%c0, %c0_1] : memref<64x64xf32, #tpu.memory_space<vmem>>, vector<64x64xf32>
    %c0_2 = arith.constant 0 : index
    %c0_3 = arith.constant 0 : index
    %4 = vector.load %arg5[%c0_2, %c0_3] : memref<1x64xf32, #tpu.memory_space<vmem>>, vector<1x64xf32>
    %c0_4 = arith.constant 0 : index
    %c0_5 = arith.constant 0 : index
    %5 = vector.load %arg6[%c0_4, %c0_5] : memref<1x64xf32, #tpu.memory_space<vmem>>, vector<1x64xf32>
    %c0_6 = arith.constant 0 : index
    %c0_7 = arith.constant 0 : index
    %6 = vector.load %arg1[%c0_6, %c0_7] : memref<8x32xf32, #tpu.memory_space<vmem>>, vector<8x32xf32>
    %7 = vector.extract_strided_slice %3 {offsets = [0, 0], sizes = [32, 64], strides = [1, 1]} : vector<64x64xf32> to vector<32x64xf32>
    %cst = arith.constant dense<0.000000e+00> : vector<8x64xf32>
    %8 = tpu.matmul %6, %7, %cst {dimension_numbers = #tpu.dot_dimension_numbers<[1], [0], [0], [1], [0, 0, 1, 1], [], []>} : vector<8x32xf32>, vector<32x64xf32>, vector<8x64xf32> -> vector<8x64xf32>
    %c0_8 = arith.constant 0 : index
    %c0_9 = arith.constant 0 : index
    %9 = vector.load %arg2[%c0_8, %c0_9] : memref<8x32xf32, #tpu.memory_space<vmem>>, vector<8x32xf32>
    %10 = vector.extract_strided_slice %3 {offsets = [32, 0], sizes = [32, 64], strides = [1, 1]} : vector<64x64xf32> to vector<32x64xf32>
    %cst_10 = arith.constant dense<0.000000e+00> : vector<8x64xf32>
    %11 = tpu.matmul %9, %10, %cst_10 {dimension_numbers = #tpu.dot_dimension_numbers<[1], [0], [0], [1], [0, 0, 1, 1], [], []>} : vector<8x32xf32>, vector<32x64xf32>, vector<8x64xf32> -> vector<8x64xf32>
    %c0_11 = arith.constant 0 : index
    %c0_12 = arith.constant 0 : index
    %12 = vector.load %arg3[%c0_11, %c0_12] : memref<8x32xf32, #tpu.memory_space<vmem>>, vector<8x32xf32>
    %13 = vector.extract_strided_slice %3 {offsets = [32, 0], sizes = [32, 64], strides = [1, 1]} : vector<64x64xf32> to vector<32x64xf32>
    %cst_13 = arith.constant dense<0.000000e+00> : vector<8x64xf32>
    %14 = tpu.matmul %12, %13, %cst_13 {dimension_numbers = #tpu.dot_dimension_numbers<[1], [0], [0], [1], [0, 0, 1, 1], [], []>} : vector<8x32xf32>, vector<32x64xf32>, vector<8x64xf32> -> vector<8x64xf32>
    %15 = vector.broadcast %4 : vector<1x64xf32> to vector<8x64xf32>
    %16 = arith.addf %8, %15 : vector<8x64xf32>
    %17 = arith.addf %16, %11 : vector<8x64xf32>
    %cst_14 = arith.constant 0.000000e+00 : f32
    %18 = vector.broadcast %cst_14 : f32 to vector<8x64xf32>
    %19 = arith.maximumf %17, %18 : vector<8x64xf32>
    %20 = arith.addf %16, %14 : vector<8x64xf32>
    %cst_15 = arith.constant 0.000000e+00 : f32
    %21 = vector.broadcast %cst_15 : f32 to vector<8x64xf32>
    %22 = arith.maximumf %20, %21 : vector<8x64xf32>
    %23 = vector.broadcast %5 : vector<1x64xf32> to vector<8x64xf32>
    %24 = arith.mulf %19, %23 : vector<8x64xf32>
    %cst_16 = arith.constant dense<0.000000e+00> : vector<64xf32>
    %25 = vector.multi_reduction <add>, %24, %cst_16 [0] : vector<8x64xf32> to vector<64xf32>
    %26 = vector.shape_cast %25 : vector<64xf32> to vector<1x64xf32>
    %c0_17 = arith.constant 0 : index
    %c0_18 = arith.constant 0 : index
    %27 = vector.load %arg8[%c0_17, %c0_18] : memref<1x1xf32, #tpu.memory_space<vmem>>, vector<1x1xf32>
    %cst_19 = arith.constant dense<0.000000e+00> : vector<1xf32>
    %28 = vector.multi_reduction <add>, %26, %cst_19 [1] : vector<1x64xf32> to vector<1xf32>
    %29 = vector.shape_cast %28 : vector<1xf32> to vector<1x1xf32>
    %30 = arith.addf %27, %29 : vector<1x1xf32>
    %c0_20 = arith.constant 0 : index
    %c0_21 = arith.constant 0 : index
    %31 = vector.load %arg8[%c0_20, %c0_21] : memref<1x1xf32, #tpu.memory_space<vmem>>, vector<1x1xf32>
    tpu.vector_store %arg8[%c0_20, %c0_21], %30 {strides = array<i32>} : memref<1x1xf32, #tpu.memory_space<vmem>>, vector<1x1xf32>,
    %32 = vector.broadcast %5 : vector<1x64xf32> to vector<8x64xf32>
    %33 = arith.mulf %22, %32 : vector<8x64xf32>
    %cst_22 = arith.constant dense<0.000000e+00> : vector<8xf32>
    %34 = vector.multi_reduction <add>, %33, %cst_22 [1] : vector<8x64xf32> to vector<8xf32>
    %35 = vector.shape_cast %34 : vector<8xf32> to vector<8x1xf32>
    %cst_23 = arith.constant dense<0xFF800000> : vector<1xf32>
    %36 = vector.multi_reduction <maximumf>, %35, %cst_23 [0] : vector<8x1xf32> to vector<1xf32>
    %37 = vector.shape_cast %36 : vector<1xf32> to vector<1x1xf32>
    %c0_24 = arith.constant 0 : index
    %c0_25 = arith.constant 0 : index
    %38 = vector.load %arg9[%c0_24, %c0_25] : memref<1x1xf32, #tpu.memory_space<vmem>>, vector<1x1xf32>
    %39 = arith.maximumf %38, %37 : vector<1x1xf32>
    %40 = vector.broadcast %39 : vector<1x1xf32> to vector<8x1xf32>
    %41 = arith.subf %35, %40 : vector<8x1xf32>
    %42 = math.exp %41 : vector<8x1xf32>
    %cst_26 = arith.constant dense<0.000000e+00> : vector<1xf32>
    %43 = vector.multi_reduction <add>, %42, %cst_26 [0] : vector<8x1xf32> to vector<1xf32>
    %44 = vector.shape_cast %43 : vector<1xf32> to vector<1x1xf32>
    %c0_27 = arith.constant 0 : index
    %c0_28 = arith.constant 0 : index
    %45 = vector.load %arg10[%c0_27, %c0_28] : memref<1x1xf32, #tpu.memory_space<vmem>>, vector<1x1xf32>
    %46 = arith.subf %38, %39 : vector<1x1xf32>
    %47 = math.exp %46 : vector<1x1xf32>
    %48 = arith.mulf %45, %47 : vector<1x1xf32>
    %49 = arith.addf %48, %44 : vector<1x1xf32>
    %c0_29 = arith.constant 0 : index
    %c0_30 = arith.constant 0 : index
    %50 = vector.load %arg10[%c0_29, %c0_30] : memref<1x1xf32, #tpu.memory_space<vmem>>, vector<1x1xf32>
    tpu.vector_store %arg10[%c0_29, %c0_30], %49 {strides = array<i32>} : memref<1x1xf32, #tpu.memory_space<vmem>>, vector<1x1xf32>,
    %c0_31 = arith.constant 0 : index
    %c0_32 = arith.constant 0 : index
    %51 = vector.load %arg9[%c0_31, %c0_32] : memref<1x1xf32, #tpu.memory_space<vmem>>, vector<1x1xf32>
    tpu.vector_store %arg9[%c0_31, %c0_32], %39 {strides = array<i32>} : memref<1x1xf32, #tpu.memory_space<vmem>>, vector<1x1xf32>,
    %c0_i32_33 = arith.constant 0 : i32
    %52 = arith.cmpi eq, %arg0, %c0_i32_33 : i32
    %53 = arith.extui %52 : i1 to i32
    %c0_i32_34 = arith.constant 0 : i32
    %54 = arith.cmpi ne, %53, %c0_i32_34 : i32
    scf.if %54 {
      %c0_35 = arith.constant 0 : index
      %c0_36 = arith.constant 0 : index
      %55 = vector.load %arg8[%c0_35, %c0_36] : memref<1x1xf32, #tpu.memory_space<vmem>>, vector<1x1xf32>
      %cst_37 = arith.constant 1.250000e-01 : f32
      %56 = vector.broadcast %cst_37 : f32 to vector<1x1xf32>
      %57 = arith.mulf %55, %56 : vector<1x1xf32>
      %c0_38 = arith.constant 0 : index
      %c0_39 = arith.constant 0 : index
      %58 = vector.load %arg9[%c0_38, %c0_39] : memref<1x1xf32, #tpu.memory_space<vmem>>, vector<1x1xf32>
      %c0_40 = arith.constant 0 : index
      %c0_41 = arith.constant 0 : index
      %59 = vector.load %arg10[%c0_40, %c0_41] : memref<1x1xf32, #tpu.memory_space<vmem>>, vector<1x1xf32>
      %cst_42 = arith.constant 1.250000e-01 : f32
      %60 = vector.broadcast %cst_42 : f32 to vector<1x1xf32>
      %61 = arith.mulf %59, %60 : vector<1x1xf32>
      %62 = math.log %61 : vector<1x1xf32>
      %63 = arith.addf %58, %62 : vector<1x1xf32>
      %64 = arith.subf %57, %63 : vector<1x1xf32>
      %cst_43 = arith.constant -1.44269502 : f32
      %65 = vector.broadcast %cst_43 : f32 to vector<1x1xf32>
      %66 = arith.mulf %65, %64 : vector<1x1xf32>
      %c0_44 = arith.constant 0 : index
      %c0_45 = arith.constant 0 : index
      %67 = vector.load %arg7[%c0_44, %c0_45] : memref<1x1xf32, #tpu.memory_space<vmem>>, vector<1x1xf32>
      tpu.vector_store %arg7[%c0_44, %c0_45], %66 {strides = array<i32>} : memref<1x1xf32, #tpu.memory_space<vmem>>, vector<1x1xf32>,
    } else {
    }
    return
  }
  func.func @transform_0(%arg0: i32) -> (i32, i32) {
    %c0_i32 = arith.constant 0 : i32
    %c0_i32_0 = arith.constant 0 : i32
    return %arg0, %c0_i32 : i32, i32
  }
  func.func @transform_1(%arg0: i32) -> (i32, i32) {
    %c0_i32 = arith.constant 0 : i32
    %c0_i32_0 = arith.constant 0 : i32
    return %arg0, %c0_i32 : i32, i32
  }
  func.func @transform_2(%arg0: i32) -> (i32, i32) {
    %c0_i32 = arith.constant 0 : i32
    %c0_i32_0 = arith.constant 0 : i32
    return %arg0, %c0_i32 : i32, i32
  }
  func.func @transform_3(%arg0: i32) -> (i32, i32) {
    %c0_i32 = arith.constant 0 : i32
    %c0_i32_0 = arith.constant 0 : i32
    %c0_i32_1 = arith.constant 0 : i32
    return %c0_i32, %c0_i32_0 : i32, i32
  }
  func.func @transform_4(%arg0: i32) -> (i32, i32) {
    %c0_i32 = arith.constant 0 : i32
    %c0_i32_0 = arith.constant 0 : i32
    %c0_i32_1 = arith.constant 0 : i32
    return %c0_i32, %c0_i32_0 : i32, i32
  }
  func.func @transform_5(%arg0: i32) -> (i32, i32) {
    %c0_i32 = arith.constant 0 : i32
    %c0_i32_0 = arith.constant 0 : i32
    %c0_i32_1 = arith.constant 0 : i32
    return %c0_i32, %c0_i32_0 : i32, i32
  }
  func.func @transform_6(%arg0: i32) -> (i32, i32) {
    %c0_i32 = arith.constant 0 : i32
    %c0_i32_0 = arith.constant 0 : i32
    %c0_i32_1 = arith.constant 0 : i32
    return %c0_i32, %c0_i32_0 : i32, i32
  }
}

</mosaic_0001>

<bundles_post_ra>
// kernel: mine_forward.1
= control target key start
LH: loop header
LB: loop body
LE: loop exit
PB: predicated region body
PF: predicated region fallthrough
CT: control target
= control target key end

     0   :  { %vm28_vm0 = vcmask 0   ;;  %v468_v3 = vmov 0.0|0.0   ;;  %v469_v6 = vmov 0.0   ;;  %vm470_vm1 = vmmov 0   ;;  %s569_s0 = inlined_call_operand.vmem [shape: f32[8,32], index: 0, kind: input, shape index: {}]   ;;  %s570_s1 = inlined_call_operand.vmem [shape: f32[8,32], index: 1, kind: input, shape index: {}]   ;;  %s571_s2 = inlined_call_operand.vmem [shape: f32[8,32], index: 2, kind: input, shape index: {}]   ;;  %s572_s3 = inlined_call_operand.vmem [shape: f32[64,64], index: 3, kind: input, shape index: {}]   ;;  %s573_s4 = inlined_call_operand.vmem [shape: f32[1,64], index: 4, kind: input, shape index: {}]   ;;  %s574_s5 = inlined_call_operand.vmem [shape: f32[1,64], index: 5, kind: input, shape index: {}]   ;;  %s575_s6 = inlined_call_operand.hbm [shape: f32[1,1], index: 6, kind: output, shape index: {}]  }
   0x1   :  { %v36_v0 = vld [vmem:[%s572_s3 + $0x20] sm:$0xff]  ;;  %v37_v1 = vld [vmem:[%s572_s3 + $0x28] sm:$0xff]  ;;  %v38_v2 = vld [vmem:[%s572_s3 + $0x30] sm:$0xff]  ;;  %415 = vmatprep.subr.bf16.mxu0 %v468_v3  ;;  %31 = vst.msk [vmem:[#allocation4] sm:$0x1] %vm28_vm0, %v469_v6  ;;  %421 = vmatprep.subr.bf16.mxu1 %v468_v3 }
   0x2   :  { %v416_v4 = vpack.c.bf16 %v37_v1, %v36_v0  ;;  %v39_v5 = vld [vmem:[%s572_s3 + $0x38] sm:$0xff]  ;;  %29 = vst.msk [vmem:[#allocation2] sm:$0x1] %vm28_vm0, %v469_v6  ;;  %390 = vmatprep.mubr.msk.f32.mxu0 %vm470_vm1, %v469_v6  ;;  %401 = vmatprep.mubr.msk.f32.mxu1 %vm470_vm1, %v469_v6 }
   0x3   :  { %v419_v7 = vpack.c.bf16 %v39_v5, %v38_v2 }
   0x4   :  { %417 = vmatpush3.bf16.msra.mxu0 %v416_v4  ;;  %423 = vmatpush3.bf16.msra.mxu1 %v416_v4 }
   0x5   :  { %11 = vsyncpa [#allocation6], 0  ;;  %418 = vmatprep.subr.bf16.mxu0 %v468_v3  ;;  %v32_v8 = vld [vmem:[%s572_s3] sm:$0xff]  ;;  %v33_v9 = vld [vmem:[%s572_s3 + $0x8] sm:$0xff]  ;;  %424 = vmatprep.subr.bf16.mxu1 %v468_v3  ;;  %vm44_vm2 = vcmask 261120   ;;  %v471_v17 = vmov -inf   ;;  %v310_v44 = vlaneseq }
   0x6   :  { %v43_v10 = vld [vmem:[%s570_s1] sm:$0xff]  ;;  %v428_v11 = vpack.c.bf16 %v33_v9, %v32_v8  ;;  %v34_v13 = vld [vmem:[%s572_s3 + $0x10] sm:$0xff]  ;;  %v35_v14 = vld [vmem:[%s572_s3 + $0x18] sm:$0xff]  ;;  %30 = vst.msk [vmem:[#allocation3] sm:$0x1] %vm28_vm0, %v471_v17  ;;  %vm282_vm3 = vcmask 523264  }
   0x7   :  { %v118_v12 = vld [vmem:[%s571_s2] sm:$0xff]  ;;  %v431_v15 = vpack.c.bf16 %v35_v14, %v34_v13  ;;  %v311_v47 = vshrl.u32 %v310_v44, 7  ;;  %vm318_vm4 = vcmask 7168  }
   0x8   :  { %420 = vmatpush3.bf16.msra.mxu0 %v419_v7  ;;  %426 = vmatpush3.bf16.msra.mxu1 %v419_v7  ;;  %v42_v16 = vld [vmem:[%s569_s0] sm:$0xff]  ;;  %s472_s0 = smov [#allocation5]  }
   0x9   :  { %427 = vmatprep.subr.bf16.mxu0 %v468_v3  ;;  %v364_v22 = vld [vmem:[%s573_s4] ss:$0 sm:$0xff]  ;;  %v312_v51 = vsub.s32 0, %v311_v47  ;;  %v326_v5 = vld [vmem:[#allocation4] sm:$0x1]  ;;  %s354_s4 = sshll.u32 %s472_s0, 4  ;;  %s355_s4 = int_to_ptr.vmem [resolvable:$true] %s354_s4 }
   0xa   :  { %v366_v28 = vld [vmem:[%s574_s5] ss:$0 sm:$0xff]  ;;  %s444_s5 = scalar_lea.vmem %s355_s4, 16  ;;  %s448_s20 = scalar_lea.vmem %s355_s4, 32 }
   0xb   :  { %391 = vmatmul.mubr.msk.f32.vlgmr.msra.gmra.mrb[0].mxu0 %vm44_vm2, %v43_v10  ;;  %402 = vmatmul.mubr.msk.f32.vlgmr.msra.gmra.mrb[0].mxu1 %vm44_vm2, %v118_v12  ;;  %v290_v53 = vld [vmem:[#allocation2] sm:$0x1]  ;;  %p445_p0 = scmp.ne.s32.totalorder %s355_s4, %s444_s5  ;;  %p449_p1 = scmp.lt.s32.totalorder %s355_s4, %s355_s4 }
   0xc   :  { %429 = vmatpush3.bf16.msra.mxu0 %v428_v11  ;;  %412 = vmatprep.mubr.msk.f32.mxu0 %vm470_vm1, %v469_v6  ;;  %p450_p2 = scmp.lt.s32.totalorder %s448_s20, %s444_s5 }
   0xd   :  { %430 = vmatprep.subr.bf16.mxu0 %v468_v3  ;;  %v307_v50 = vld [vmem:[#allocation3] sm:$0x1] }
   0xe   :  { %p451_p3 = por %p450_p2, %p449_p1 }
  0x10   :  { %432 = vmatpush3.bf16.msra.mxu0 %v431_v15  ;;  %p452_p4 = pnand %p451_p3, %p445_p0 }
  0x13   :  { %413 = vmatmul.mubr.msk.f32.vlgmr.msra.gmra.mrb[2].mxu0 %vm44_vm2, %v42_v16 }
  0xde   :  { %v114_v18 = vpop.f32.mrb[0].mxu0  ;;  %v188_v19 = vpop.f32.mrb[0].mxu1 }
  0xdf   :  { %v392_v20 = vpop.f32.mrb[1].mxu0  ;;  %v403_v21 = vpop.f32.mrb[1].mxu1 }
  0xe6   :  { %v267_v23 = vpop.f32.mrb[2].mxu0 }
  0xe7   :  { %v268_v24 = vadd.f32 %v364_v22, %v267_v23  ;;  %v414_v25 = vpop.f32.mrb[3].mxu0 }
  0xe9   :  { %v271_v26 = vadd.f32 %v268_v24, %v114_v18  ;;  %v273_v27 = vadd.f32 %v268_v24, %v188_v19 }
  0xeb   :  { %v272_v29 = vmax.f32 %v271_v26, 0.0  ;;  %v274_v30 = vmax.f32 %v273_v27, 0.0 }
  0xed   :  { %v297_v31 = vmul.f32 %v366_v28, %v274_v30  ;;  %v281_v32 = vmul.f32 %v366_v28, %v272_v29 }
  0xef   :  { %v298_v33 = vsel %vm282_vm3, %v297_v31, 0.0  ;;  %v283_v34 = vsel %vm282_vm3, %v281_v32, 0.0 }
  0xf0   :  { %299 = vadd.xlane.f32.xlu0 %v298_v33  ;;  %v284_v35 = vrot.slane %v283_v34, 4 }
  0xf2   :  { %v285_v36 = vadd.f32 %v284_v35, %v283_v34 }
  0xf4   :  { %v286_v37 = vrot.slane %v285_v36, 2 }
  0xf6   :  { %v287_v38 = vadd.f32 %v286_v37, %v285_v36 }
  0xf8   :  { %v288_v39 = vrot.slane %v287_v38, 1 }
  0xfa   :  { %v289_v40 = vadd.f32 %v288_v39, %v287_v38 }
  0xfc   :  { %v291_v41 = vsel %vm282_vm3, %v289_v40, 0.0 }
  0xfd   :  { %292 = vadd.xlane.f32.xlu0 %v291_v41 }
 0x17d   :  { %v300_v42 = vpop.xlane.xlu0 %299 }
 0x17e   :  { %v301_v43 = vrot.slane %v300_v42, 4 }
 0x180   :  { %v302_v45 = vmax.f32 %v300_v42, %v301_v43 }
 0x182   :  { %v303_v46 = vrot.slane %v302_v45, 2 }
 0x184   :  { %v304_v48 = vmax.f32 %v302_v45, %v303_v46 }
 0x186   :  { %v305_v49 = vrot.slane %v304_v48, 1 }
 0x188   :  { %v306_v52 = vmax.f32 %v304_v48, %v305_v49 }
 0x18a   :  { %v308_v54 = vmax.f32 %v307_v50, %v306_v52  ;;  %v293_v55 = vpop.xlane.xlu0 %292 }
 0x18b   :  { %v294_v56 = vadd.f32 %v293_v55, %v290_v53 }
 0x18c   :  { %v313_v57 = vrot.slane %v308_v54, %v312_v51  ;;  %333 = vst.msk [vmem:[#allocation3] sm:$0x1] %vm28_vm0, %v308_v54  ;;  %v327_v60 = vsub.f32 %v307_v50, %v308_v54 }
 0x18d   :  { %296 = vst.msk [vmem:[#allocation2] sm:$0x1] %vm28_vm0, %v294_v56 }
 0x18e   :  { %v315_v58 = vsub.f32 %v300_v42, %v313_v57  ;;  %v328_v61 = vmul.f32 1.442695, %v327_v60 }
 0x190   :  { %v316_v59 = vmul.f32 1.442695, %v315_v58 }
 0x192   :  { %438 = vpow2.f32 %v316_v59 }
 0x193   :  { %440 = vpow2.f32 %v328_v61  ;;  %v339_v15 = vld [vmem:[#allocation3] sm:$0x1] }
 0x194   :  { %v337_v13 = vld [vmem:[#allocation2] sm:$0x1] }
 0x195   :  { %v338_v16 = vmul.f32 0.125, %v337_v13 }
 0x19c   :  { %v439_v62 = vpop.eup %438 }
 0x19d   :  { %v319_v63 = vsel %vm318_vm4, %v439_v62, 0.0  ;;  %v441_v4 = vpop.eup %440 }
 0x19e   :  { %v320_v0 = vrot.slane %v319_v63, 4  ;;  %v330_v8 = vmul.f32 %v441_v4, %v326_v5 }
 0x1a0   :  { %v321_v1 = vadd.f32 %v320_v0, %v319_v63 }
 0x1a2   :  { %v322_v2 = vrot.slane %v321_v1, 2 }
 0x1a4   :  { %v323_v3 = vadd.f32 %v322_v2, %v321_v1 }
 0x1a6   :  { %v324_v6 = vrot.slane %v323_v3, 1 }
 0x1a8   :  { %v325_v7 = vadd.f32 %v324_v6, %v323_v3 }
 0x1aa   :  { %v331_v9 = vadd.f32 %v330_v8, %v325_v7 }
 0x1ac   :  { %332 = vst.msk [vmem:[#allocation4] sm:$0x1] %vm28_vm0, %v331_v9 }
 0x1b3   :  { %v340_v10 = vld [vmem:[#allocation4] sm:$0x1] }
 0x1b4   :  { %v341_v11 = vmul.f32 0.125, %v340_v10 }
 0x1b6   :  { %442 = vlog2.f32 %v341_v11 }
 0x1c0   :  { %v443_v12 = vpop.eup %442 }
 0x1c1   :  { %v343_v14 = vmul.f32 0.6931472, %v443_v12 }
 0x1c3   :  { %v344_v17 = vadd.f32 %v343_v14, %v339_v15 }
 0x1c5   :  { %v345_v18 = vsub.f32 %v338_v16, %v344_v17 }
 0x1c7   :  { %v346_v19 = vmul.f32 -1.442695, %v345_v18 }
 0x1c9   :  { %347 = vst.msk [vmem:[#allocation5] sm:$0x1] %vm28_vm0, %v346_v19 }
 0x1ca   :  { %455 = shalt.err (!%p452_p4)
}
 0x1cb   :  { %s456_s23 = scalar_lea.hbm %s575_s6, 16 }
 0x1cc   :  { %p457_p5 = scmp.ne.s32.totalorder %s575_s6, %s456_s23  ;;  %p460_p6 = scmp.lt.u32.totalorder %s456_s23, %s575_s6 }
 0x1ce   :  { %p462_p7 = pnand %p460_p6, %p457_p5 }
 0x1d0   :  { %465 = shalt.err (!%p462_p7)
}
 0x1d1   :  { %357 = dma.vmem_to_hbm [thread:$0]  %s355_s4, 16, %s575_s6, [#allocation6]  }
 0x1d2   :  { %466 = dma.done.wait [#allocation6], 16  }
 0x1d3   :  { %467 = vsyncadd [#allocation6], 4294967280 }
 0x1d4   :  { %361 = vsyncpa [#allocation6], 1 }

</bundles_post_ra>
